<compile_context>
chip_gen: v7x
topology: tpu7x:2x2x1
jax: 0.10.0
libtpu: 0.0.40
codegen_flags: <defaults>
</compile_context>

<pallas_src>
import numpy as np
import jax
import jax.numpy as jnp
from jax.experimental import pallas as pl
from jax.experimental.pallas import tpu as pltpu

# ----------------------------- configs ------------------------------------
CONFIGS = {'veh_hidden': 16, 'req_hidden': 16, 'pas_hidden': 16,
           'act_hidden': 64}
OBS_SHAPE = {'req_x': 10, 'veh_x': 8, 'pas_x': 10}

F32 = jnp.float32
BF16 = jnp.bfloat16
LANE = 128
MiB = 1024 * 1024


def _dot(a, b):
    return jnp.dot(a, b, preferred_element_type=jnp.float32)


def _round_up(x, m):
    return (x + m - 1) // m * m


def _nbytes(a):
    return int(np.prod(a.shape)) * a.dtype.itemsize


# --------------------- prologue kernel (runs once) --------------------------
def prologue_kernel(veh_xT, pas_xT, m_vpT, wvehT, bvehT, wpasT, bpasT, vp_ref):
    veh_f = jnp.tanh(_dot(wvehT[...], veh_xT[...]) + bvehT[...])     # (16, Nv_p)
    pas_f = jnp.tanh(_dot(wpasT[...], pas_xT[...]) + bpasT[...])     # (16, Np_p)
    pas_mean = _dot(pas_f, m_vpT[...])                               # (16, Nv_p)
    vp_ref[...] = jnp.concatenate([veh_f, pas_mean], axis=0).astype(vp_ref.dtype)


# ------------------- main kernel (per request tile) -------------------------
def actor_kernel(req_xT, m_rvT, vp_feat,
                 wreqT, breqT, w1T, b1T, w2T, b2T, w3T, b3T, o_ref):
    # request encoder, features on sublanes / requests on lanes
    req_f = jnp.tanh(_dot(wreqT[...], req_xT[...]) + breqT[...])     # (16, TR) f32
    # fused req<-veh aggregation: one (32, Nv_p) @ (Nv_p, TR) K-stream
    agg = _dot(vp_feat[...], m_rvT[...])                             # (32, TR) f32 acc
    # actor MLP 48 -> 64 -> 64 -> 1; first layer as ONE K=48 matmul
    feat = jnp.concatenate([req_f, agg], axis=0)                     # (48, TR)
    h = jnp.tanh(_dot(w1T[...], feat) + b1T[...])                    # (64, TR)
    h = jnp.tanh(_dot(w2T[...], h) + b2T[...])                       # (64, TR)
    o_ref[...] = _dot(w3T[...], h) + b3T[...]                        # (1, TR) lane-dense


# ----------------------- glue: aggregation matrices -------------------------
def gather_scatter_mean_matrix(sender, receiver, dim_size, src_size):
    """M such that M @ X == scatter_mean(X[receiver], sender, dim=0, dim_size)."""
    tgt = (sender[None, :] == jnp.arange(dim_size)[:, None]).astype(F32)   # (dim, E)
    src = (receiver[None, :] == jnp.arange(src_size)[:, None]).astype(F32) # (src, E)
    counts = tgt.sum(axis=1, keepdims=True)
    return (tgt @ src.T) / jnp.maximum(counts, 1.0)                        # (dim, src)


# ------------------------------- wrapper -----------------------------------
def graph_actor_forward(params, inputs, *, tile_r=None, use_bf16=True):
    req_x = inputs['requests_x'].astype(F32)
    veh_x = inputs['vehicles_x'].astype(F32)
    pas_x = inputs['passengers_x'].astype(F32)
    Nr, Dr = req_x.shape
    Nv, _ = veh_x.shape
    Np_, _ = pas_x.shape

    Nv_p = _round_up(Nv, LANE)
    Np_p = _round_up(Np_, LANE)

    agg_dtype = BF16 if use_bf16 else F32
    agg_isz = 2 if use_bf16 else 4

    # ---- tile_r: v7x-safe VMEM budget + >=2 tiles for dual-TC sharding -----
    if tile_r is None:
        tile_r = 512                                    # large tiles amortize grid-step overhead (v5e/v6e)
        while tile_r > LANE and 2 * Nv_p * tile_r * agg_isz > 20 * MiB:
            tile_r //= 2                                # bound double-buffered m_rv^T tile (v7x: 64 MiB VMEM)
        while tile_r > LANE and pl.cdiv(Nr, tile_r) < 2:
            tile_r //= 2                                # give both v7x TensorCores a tile when possible
    Nr_p = _round_up(Nr, tile_r)

    # aggregation matrices at padded sizes (padding rows/cols are exactly 0)
    m_vp = gather_scatter_mean_matrix(inputs['veh2pas_sender_edge_index'],
                                      inputs['veh2pas_receiver_edge_index'],
                                      dim_size=Nv_p, src_size=Np_p)         # (Nv_p, Np_p)
    m_rv = gather_scatter_mean_matrix(inputs['req2veh_sender_edge_index'],
                                      inputs['req2veh_receiver_edge_index'],
                                      dim_size=Nr_p, src_size=Nv_p)         # (Nr_p, Nv_p)

    # transposed, lane-dense operands (node axis -> lanes)
    req_xT = jnp.pad(req_x, ((0, Nr_p - Nr), (0, 0))).T                     # (Dr, Nr_p)
    veh_xT = jnp.pad(veh_x, ((0, Nv_p - Nv), (0, 0))).T                     # (Dv, Nv_p)
    pas_xT = jnp.pad(pas_x, ((0, Np_p - Np_), (0, 0))).T                    # (Dp, Np_p)
    m_vpT = m_vp.T                                                          # (Np_p, Nv_p) f32, used once
    m_rvT = m_rv.T.astype(agg_dtype)                                        # (Nv_p, Nr_p)  dominant stream

    p = params
    wreqT, breqT = p['wreq'].T, p['breq'].T
    wvehT, bvehT = p['wveh'].T, p['bveh'].T
    wpasT, bpasT = p['wpas'].T, p['bpas'].T
    w1T, b1T = p['w1'].T, p['b1'].T            # (64, 48) fused [req | veh | pas]
    w2T, b2T = p['w2'].T, p['b2'].T            # (64, 64), (64, 1)
    w3T, b3T = p['w3'].T, p['b3'].T            # (1, 64), (1, 1)

    # ---- prologue: veh/pas encoders + veh<-pas scatter_mean, ONCE -----------
    vp_feat = pl.pallas_call(
        prologue_kernel,
        out_shape=jax.ShapeDtypeStruct((32, Nv_p), agg_dtype),
    )(veh_xT, pas_xT, m_vpT, wvehT, bvehT, wpasT, bpasT)

    # ---- main kernel over request tiles -------------------------------------
    args = (req_xT, m_rvT, vp_feat,
            wreqT, breqT, w1T, b1T, w2T, b2T, w3T, b3T)

    def full(a):
        return pl.BlockSpec(a.shape, lambda i: (0, 0))

    in_specs = ([pl.BlockSpec((Dr, tile_r), lambda i: (0, i)),      # request feature tile
                 pl.BlockSpec((Nv_p, tile_r), lambda i: (0, i)),    # m_rv^T column tile (streamed)
                 full(vp_feat)]                                     # stacked [veh_f; pas_mean], resident
                + [full(a) for a in args[3:]])                      # weights / biases, resident

    # cost estimate consistent with what the grid actually executes
    flops = 2 * Nr_p * (16 * Dr + 32 * Nv_p + 48 * 64 + 64 * 64 + 64)
    transcendentals = Nr_p * (16 + 64 + 64)
    bytes_accessed = sum(_nbytes(a) for a in args) + 4 * Nr_p

    # VMEM budget: resident constants + double-buffered streamed tiles, v7x-safe cap
    resident = sum(_nbytes(a) for a in args[2:])
    streamed = 2 * (Dr * tile_r * 4 + Nv_p * tile_r * agg_isz + tile_r * 4)
    vmem_limit = int(min(max(resident + streamed + 8 * MiB, 16 * MiB), 40 * MiB))

    out = pl.pallas_call(
        actor_kernel,
        out_shape=jax.ShapeDtypeStruct((1, Nr_p), F32),
        grid=(Nr_p // tile_r,),
        in_specs=in_specs,
        out_specs=pl.BlockSpec((1, tile_r), lambda i: (0, i)),
        compiler_params=pltpu.CompilerParams(
            dimension_semantics=("parallel",),
            vmem_limit_bytes=vmem_limit),
        cost_estimate=pl.CostEstimate(flops=flops,
                                      transcendentals=transcendentals,
                                      bytes_accessed=bytes_accessed),
    )(*args)

    return out[0, :Nr][:, None]                                     # (Nr, 1) like the module


# ------------------------- parameter creation ------------------------------
def xavier_normal(key, fan_in, fan_out, gain):
    std = gain * np.sqrt(2.0 / (fan_in + fan_out))
    return (std * jax.random.normal(key, (fan_in, fan_out))).astype(F32)


def make_params(key):
    gain = 5.0 / 3.0  # nn.init.calculate_gain('tanh')
    keys = jax.random.split(key, 6)
    rh, vh, ph, ah = (CONFIGS['req_hidden'], CONFIGS['veh_hidden'],
                      CONFIGS['pas_hidden'], CONFIGS['act_hidden'])

    def linear(k, fin, fout):
        return xavier_normal(k, fin, fout, gain), jnp.zeros((1, fout), F32)

    p = {}
    p['wreq'], p['breq'] = linear(keys[0], OBS_SHAPE['req_x'], rh)
    p['wveh'], p['bveh'] = linear(keys[1], OBS_SHAPE['veh_x'], vh)
    p['wpas'], p['bpas'] = linear(keys[2], OBS_SHAPE['pas_x'], ph)
    p['w1'], p['b1'] = linear(keys[3], rh + vh + ph, ah)
    p['w2'], p['b2'] = linear(keys[4], ah, ah)
    p['w3'], p['b3'] = linear(keys[5], ah, 1)
    return p


# ---------------------- pure-JAX reference (check) --------------------------
def reference_forward(p, inp):
    req_x, veh_x, pas_x = inp['requests_x'], inp['vehicles_x'], inp['passengers_x']
    Nr, Nv = req_x.shape[0], veh_x.shape[0]

    def seg_mean(data, seg, num):
        s = jax.ops.segment_sum(data, seg, num_segments=num)
        c = jax.ops.segment_sum(jnp.ones((data.shape[0], 1), F32), seg,
                                num_segments=num)
        return s / jnp.maximum(c, 1.0)

    rq = jnp.tanh(req_x @ p['wreq'] + p['breq'])
    vh = jnp.tanh(veh_x @ p['wveh'] + p['bveh'])
    ps = jnp.tanh(pas_x @ p['wpas'] + p['bpas'])
    pas_mean = seg_mean(ps[inp['veh2pas_receiver_edge_index']],
                        inp['veh2pas_sender_edge_index'], Nv)
    vh_cat = jnp.concatenate([vh, pas_mean], axis=-1)
    veh_agg = seg_mean(vh_cat[inp['req2veh_receiver_edge_index']],
                       inp['req2veh_sender_edge_index'], Nr)
    feat = jnp.concatenate([rq, veh_agg], axis=-1)
    h = jnp.tanh(feat @ p['w1'] + p['b1'])
    h = jnp.tanh(h @ p['w2'] + p['b2'])
    return h @ p['w3'] + p['b3']


# --------------------------------- main -------------------------------------
if __name__ == "__main__":
    key = jax.random.PRNGKey(0)
    kp, kf = jax.random.split(key)
    params = make_params(kp)

    # small synthetic graph
    Nr, Nv, Np_ = 12, 6, 8
    E_vp, E_rv = 10, 16
    ks = jax.random.split(kf, 8)
    inputs = {
        'requests_x': jax.random.normal(ks[0], (Nr, OBS_SHAPE['req_x']), dtype=F32),
        'vehicles_x': jax.random.normal(ks[1], (Nv, OBS_SHAPE['veh_x']), dtype=F32),
        'passengers_x': jax.random.normal(ks[2], (Np_, OBS_SHAPE['pas_x']), dtype=F32),
        'veh2pas_sender_edge_index': jax.random.randint(ks[3], (E_vp,), 0, Nv),
        'veh2pas_receiver_edge_index': jax.random.randint(ks[4], (E_vp,), 0, Np_),
        'req2veh_sender_edge_index': jax.random.randint(ks[5], (E_rv,), 0, Nr),
        'req2veh_receiver_edge_index': jax.random.randint(ks[6], (E_rv,), 0, Nv),
    }

    ref_logits = np.asarray(reference_forward(params, inputs))

    # 1) exact-f32 path: must reproduce the module's forward to 1e-4
    logits_f32 = jax.block_until_ready(
        graph_actor_forward(params, inputs, use_bf16=False))
    np.testing.assert_allclose(np.asarray(logits_f32), ref_logits,
                               rtol=1e-4, atol=1e-4)

    # 2) bf16-aggregation path (performance configuration): tolerance is
    #    deliberately loosened — m_rv^T and [veh_f; pas_mean] are quantized to
    #    bfloat16 (f32 accumulation) per the performance review.
    logits_bf16 = jax.block_until_ready(
        graph_actor_forward(params, inputs, use_bf16=True))
    np.testing.assert_allclose(np.asarray(logits_bf16), ref_logits,
                               rtol=5e-2, atol=5e-2)

    print("KERNEL_OK")
</pallas_src>

<mosaic_0001>
module attributes {stable_mosaic.version = 11 : i64} {
  func.func @prologue_kernel(%arg0: memref<8x128xf32, #tpu.memory_space<vmem>>, %arg1: memref<10x128xf32, #tpu.memory_space<vmem>>, %arg2: memref<128x128xf32, #tpu.memory_space<vmem>>, %arg3: memref<16x8xf32, #tpu.memory_space<vmem>>, %arg4: memref<16x1xf32, #tpu.memory_space<vmem>>, %arg5: memref<16x10xf32, #tpu.memory_space<vmem>>, %arg6: memref<16x1xf32, #tpu.memory_space<vmem>>, %arg7: memref<32x128xf32, #tpu.memory_space<vmem>>) attributes {dimension_semantics = [], scalar_prefetch = 0 : i64, scratch_operands = 0 : i64, tpu.core_type = #tpu.core_type<tc>} {
    %c0 = arith.constant 0 : index
    %c0_0 = arith.constant 0 : index
    %0 = vector.load %arg3[%c0, %c0_0] : memref<16x8xf32, #tpu.memory_space<vmem>>, vector<16x8xf32>
    %c0_1 = arith.constant 0 : index
    %c0_2 = arith.constant 0 : index
    %1 = vector.load %arg0[%c0_1, %c0_2] : memref<8x128xf32, #tpu.memory_space<vmem>>, vector<8x128xf32>
    %cst = arith.constant dense<0.000000e+00> : vector<16x128xf32>
    %2 = tpu.matmul %0, %1, %cst {dimension_numbers = #tpu.dot_dimension_numbers<[1], [0], [0], [1], [0, 0, 1, 1], [], []>} : vector<16x8xf32>, vector<8x128xf32>, vector<16x128xf32> -> vector<16x128xf32>
    %c0_3 = arith.constant 0 : index
    %c0_4 = arith.constant 0 : index
    %3 = vector.load %arg4[%c0_3, %c0_4] : memref<16x1xf32, #tpu.memory_space<vmem>>, vector<16x1xf32>
    %4 = vector.broadcast %3 : vector<16x1xf32> to vector<16x128xf32>
    %5 = arith.addf %2, %4 : vector<16x128xf32>
    %6 = math.tanh %5 : vector<16x128xf32>
    %c0_5 = arith.constant 0 : index
    %c0_6 = arith.constant 0 : index
    %7 = vector.load %arg5[%c0_5, %c0_6] : memref<16x10xf32, #tpu.memory_space<vmem>>, vector<16x10xf32>
    %c0_7 = arith.constant 0 : index
    %c0_8 = arith.constant 0 : index
    %8 = vector.load %arg1[%c0_7, %c0_8] : memref<10x128xf32, #tpu.memory_space<vmem>>, vector<10x128xf32>
    %cst_9 = arith.constant dense<0.000000e+00> : vector<16x128xf32>
    %9 = tpu.matmul %7, %8, %cst_9 {dimension_numbers = #tpu.dot_dimension_numbers<[1], [0], [0], [1], [0, 0, 1, 1], [], []>} : vector<16x10xf32>, vector<10x128xf32>, vector<16x128xf32> -> vector<16x128xf32>
    %c0_10 = arith.constant 0 : index
    %c0_11 = arith.constant 0 : index
    %10 = vector.load %arg6[%c0_10, %c0_11] : memref<16x1xf32, #tpu.memory_space<vmem>>, vector<16x1xf32>
    %11 = vector.broadcast %10 : vector<16x1xf32> to vector<16x128xf32>
    %12 = arith.addf %9, %11 : vector<16x128xf32>
    %13 = math.tanh %12 : vector<16x128xf32>
    %c0_12 = arith.constant 0 : index
    %c0_13 = arith.constant 0 : index
    %14 = vector.load %arg2[%c0_12, %c0_13] : memref<128x128xf32, #tpu.memory_space<vmem>>, vector<128x128xf32>
    %cst_14 = arith.constant dense<0.000000e+00> : vector<16x128xf32>
    %15 = tpu.matmul %13, %14, %cst_14 {dimension_numbers = #tpu.dot_dimension_numbers<[1], [0], [0], [1], [0, 0, 1, 1], [], []>} : vector<16x128xf32>, vector<128x128xf32>, vector<16x128xf32> -> vector<16x128xf32>
    %16 = tpu.concatenate %6, %15 in 0 : vector<16x128xf32>, vector<16x128xf32> -> vector<32x128xf32>
    %c0_15 = arith.constant 0 : index
    %c0_16 = arith.constant 0 : index
    %17 = vector.load %arg7[%c0_15, %c0_16] : memref<32x128xf32, #tpu.memory_space<vmem>>, vector<32x128xf32>
    tpu.vector_store %arg7[%c0_15, %c0_16], %16 {strides = array<i32>} : memref<32x128xf32, #tpu.memory_space<vmem>>, vector<32x128xf32>,
    return
  }
}

</mosaic_0001>

<bundles_post_ra>
// kernel: tpu_custom_call.1
= control target key start
LH: loop header
LB: loop body
LE: loop exit
PB: predicated region body
PF: predicated region fallthrough
CT: control target
= control target key end

     0   :  { %12 = vsyncpa [#allocation3], 0  ;;  %s656_s0 = inlined_call_operand.vmem [shape: f32[8,128], index: 0, kind: input, shape index: {}]   ;;  %s657_s1 = inlined_call_operand.vmem [shape: f32[10,128], index: 1, kind: input, shape index: {}]   ;;  %s658_s2 = inlined_call_operand.hbm [shape: f32[128,128], index: 2, kind: input, shape index: {}]   ;;  %s659_s3 = inlined_call_operand.vmem [shape: f32[16,8], index: 3, kind: input, shape index: {}]   ;;  %s660_s4 = inlined_call_operand.vmem [shape: f32[16,1], index: 4, kind: input, shape index: {}]   ;;  %s661_s5 = inlined_call_operand.vmem [shape: f32[16,10], index: 5, kind: input, shape index: {}]   ;;  %s662_s6 = inlined_call_operand.vmem [shape: f32[16,1], index: 6, kind: input, shape index: {}]   ;;  %s663_s7 = inlined_call_operand.hbm [shape: f32[32,128], index: 7, kind: output, shape index: {}]  }
   0x1   :  { %13 = vsyncpa [#allocation4], 0  ;;  %s535_s24 = smov [#allocation2]   ;;  %s487_s28 = scalar_lea.hbm %s658_s2, 2048 }
   0x2   :  { %s23_s25 = sshll.u32 %s535_s24, 4  ;;  %p488_p0 = scmp.ne.s32.totalorder %s658_s2, %s487_s28  ;;  %s24_s25 = int_to_ptr.vmem [resolvable:$true] %s23_s25 }
   0x3   :  { %p491_p1 = scmp.lt.u32.totalorder %s487_s28, %s658_s2 }
   0x5   :  { %p493_p2 = pnand %p491_p1, %p488_p0 }
   0x7   :  { %496 = shalt.err (!%p493_p2)
}
   0x8   :  { %s497_s10 = scalar_lea.vmem %s24_s25, 2048  ;;  %p502_p4 = scmp.lt.s32.totalorder %s24_s25, %s24_s25 }
   0x9   :  { %p498_p3 = scmp.ne.s32.totalorder %s24_s25, %s497_s10  ;;  %p503_p5 = scmp.lt.s32.totalorder %s497_s10, %s497_s10 }
   0xb   :  { %p504_p6 = por %p503_p5, %p502_p4 }
   0xd   :  { %p505_p7 = pnand %p504_p6, %p498_p3 }
   0xf   :  { %508 = shalt.err (!%p505_p7)
}
  0x10   :  { %s536_s11 = smov 128   ;;  %s537_s12 = smov 8  }
  0x11   :  { %29 = dma.hbm_to_vmem [thread:$0]  %s658_s2, 2048, %s24_s25, [#allocation3], %s536_s11, %s536_s11, %s537_s12  }
  0x12   :  { %531 = dma.done.wait [#allocation3], 2048  }
  0x13   :  { %532 = vsyncadd [#allocation3], 4294965248  ;;  %v538_v0 = vmov 0   ;;  %vm163_vm0 = vcmask 1041408   ;;  %vm56_vm1 = vcmask 64512   ;;  %vm539_vm2 = vmmov 1  }
  0x14   :  { %478 = vset.pattern.permute.xlu1 %v538_v0  ;;  %477 = vset.pattern.permute.xlu0 %v538_v0  ;;  %vm596_vm3 = vmpackc.low %vm163_vm0, %vm539_vm2  ;;  %v43_v2 = vld [vmem:[%s656_s0] sm:$0xff]  ;;  %v42_v4 = vld [vmem:[%s659_s3 + $0x8] sm:$0xff]  ;;  %vm156_vm4 = vcmask 80896  }
  0x15   :  { %v41_v3 = vld [vmem:[%s659_s3] sm:$0xff]  ;;  %386 = vmatprep.subr.mxu1 %v43_v2  ;;  %v143_v6 = vld [vmem:[%s657_s1 + $0x8] sm:$0x3]  ;;  %v246_v14 = vld [vmem:[#allocation2 + $0x10] sm:$0xff] }
  0x16   :  { %388 = vmatprep.mubr.msk.f32.mxu1 %vm56_vm1, %v41_v3  ;;  %v142_v5 = vld [vmem:[%s657_s1] sm:$0xff]  ;;  %387 = vmatpush3.msra.mxu1 %v43_v2  ;;  %v45_v11 = vld [vmem:[%s660_s4 + $0x8] sm:$0xff]  ;;  %v247_v15 = vld [vmem:[#allocation2 + $0x18] sm:$0xff] }
  0x17   :  { %v140_v7 = vld [vmem:[%s661_s5] sm:$0xff]  ;;  %v433_v8 = vpack.c.bf16 %v143_v6, %v142_v5  ;;  %389 = vmatmul.mubr.msk.f32.vlgmr.msra.gmra.mrb[0].mxu1 %vm56_vm1, %v42_v4  ;;  %v245_v13 = vld [vmem:[#allocation2 + $0x8] sm:$0xff]  ;;  %v443_v18 = vpack.c.bf16 %v247_v15, %v246_v14  ;;  %v250_v23 = vld [vmem:[#allocation2 + $0x30] sm:$0xff] }
  0x18   :  { %v44_v9 = vld [vmem:[%s660_s4] sm:$0xff]  ;;  %395 = vmatprep.mubr.msk.f32.mxu1 %vm156_vm4, %v140_v7  ;;  %v141_v16 = vld [vmem:[%s661_s5 + $0x8] sm:$0xff]  ;;  %v251_v24 = vld [vmem:[#allocation2 + $0x38] sm:$0xff]  ;;  %s540_s5 = smov [#allocation5]  }
  0x19   :  { %v144_v10 = vld [vmem:[%s662_s6] sm:$0xff]  ;;  %48 = vperm.xlu1 %478, %v44_v9   ;;  %435 = vmatprep.subr.msk.bf16.mxu1 %vm596_vm3, %v433_v8  ;;  %v145_v19 = vld [vmem:[%s662_s6 + $0x8] sm:$0xff]  ;;  %v451_v25 = vpack.c.bf16 %v251_v24, %v250_v23  ;;  %v254_v29 = vld [vmem:[#allocation2 + $0x50] sm:$0xff]  ;;  %s344_s6 = sshll.u32 %s540_s5, 4  ;;  %s345_s6 = int_to_ptr.vmem [resolvable:$true] %s344_s6 }
  0x1a   :  { %v244_v12 = vld [vmem:[#allocation2] sm:$0xff]  ;;  %438 = vmatpush3.bf16.msk.msra.mxu1 %vm596_vm3, %v433_v8  ;;  %148 = vperm.xlu0 %477, %v144_v10   ;;  %v249_v21 = vld [vmem:[#allocation2 + $0x28] sm:$0xff]  ;;  %v255_v30 = vld [vmem:[#allocation2 + $0x58] sm:$0xff]  ;;  %s509_s9 = scalar_lea.vmem %s345_s6, 512  ;;  %p514_p9 = scmp.lt.s32.totalorder %s345_s6, %s345_s6 }
  0x1b   :  { %v439_v17 = vpack.c.bf16 %v245_v13, %v244_v12  ;;  %v248_v20 = vld [vmem:[#allocation2 + $0x20] sm:$0xff]  ;;  %v253_v27 = vld [vmem:[#allocation2 + $0x48] sm:$0xff]  ;;  %v459_v31 = vpack.c.bf16 %v255_v30, %v254_v29  ;;  %v258_v35 = vld [vmem:[#allocation2 + $0x70] sm:$0xff]  ;;  %p510_p8 = scmp.ne.s32.totalorder %s345_s6, %s509_s9  ;;  %p515_p10 = scmp.lt.s32.totalorder %s509_s9, %s509_s9 }
  0x1c   :  { %v447_v22 = vpack.c.bf16 %v249_v21, %v248_v20  ;;  %v252_v26 = vld [vmem:[#allocation2 + $0x40] sm:$0xff]  ;;  %v257_v33 = vld [vmem:[#allocation2 + $0x68] sm:$0xff]  ;;  %v259_v36 = vld [vmem:[#allocation2 + $0x78] sm:$0xff] }
  0x1d   :  { %53 = vperm.xlu1 %478, %v45_v11   ;;  %440 = vmatprep.subr.bf16.mxu0 %v439_v17  ;;  %v455_v28 = vpack.c.bf16 %v253_v27, %v252_v26  ;;  %v256_v32 = vld [vmem:[#allocation2 + $0x60] sm:$0xff]  ;;  %v467_v37 = vpack.c.bf16 %v259_v36, %v258_v35  ;;  %p516_p11 = por %p515_p10, %p514_p9 }
  0x1e   :  { %396 = vmatmul.mubr.msk.f32.vlgmr.msra.gmra.mrb[2].mxu1 %vm156_vm4, %v141_v16  ;;  %442 = vmatpush3.bf16.msra.mxu0 %v439_v17  ;;  %v463_v34 = vpack.c.bf16 %v257_v33, %v256_v32 }
  0x1f   :  { %153 = vperm.xlu0 %477, %v145_v19   ;;  %444 = vmatprep.subr.bf16.mxu0 %v443_v18  ;;  %p517_p12 = pnand %p516_p11, %p510_p8 }
  0x22   :  { %446 = vmatpush3.bf16.msra.mxu0 %v443_v18 }
  0x23   :  { %448 = vmatprep.subr.bf16.mxu0 %v447_v22 }
  0x26   :  { %450 = vmatpush3.bf16.msra.mxu0 %v447_v22 }
  0x27   :  { %452 = vmatprep.subr.bf16.mxu0 %v451_v25 }
  0x2a   :  { %454 = vmatpush3.bf16.msra.mxu0 %v451_v25 }
  0x2b   :  { %456 = vmatprep.subr.bf16.mxu0 %v455_v28 }
  0x2e   :  { %458 = vmatpush3.bf16.msra.mxu0 %v455_v28 }
  0x2f   :  { %460 = vmatprep.subr.bf16.mxu0 %v459_v31 }
  0x32   :  { %462 = vmatpush3.bf16.msra.mxu0 %v459_v31 }
  0x33   :  { %464 = vmatprep.subr.bf16.mxu0 %v463_v34 }
  0x36   :  { %466 = vmatpush3.bf16.msra.mxu0 %v463_v34 }
  0x37   :  { %468 = vmatprep.subr.bf16.mxu0 %v467_v37 }
  0x3a   :  { %470 = vmatpush3.bf16.msra.mxu0 %v467_v37 }
  0x98   :  { %v49_v38 = vpop.permute.xlu1 %48 }
  0x99   :  { %v149_v40 = vpop.permute.xlu0 %148 }
  0x9c   :  { %v54_v39 = vpop.permute.xlu1 %53 }
  0x9e   :  { %v154_v45 = vpop.permute.xlu0 %153 }
  0xea   :  { %v390_v41 = vpop.f32.mrb[0].mxu1 }
  0xeb   :  { %v135_v42 = vadd.f32 %v390_v41, %v54_v39  ;;  %v129_v43 = vpop.f32.mrb[1].mxu1 }
  0xec   :  { %v130_v44 = vadd.f32 %v129_v43, %v49_v38 }
  0xed   :  { %479 = vtanh.f32 %v135_v42 }
  0xee   :  { %481 = vtanh.f32 %v130_v44 }
  0xf1   :  { %v397_v46 = vpop.f32.mrb[2].mxu1 }
  0xf2   :  { %v239_v47 = vadd.f32 %v397_v46, %v154_v45  ;;  %v233_v48 = vpop.f32.mrb[3].mxu1 }
  0xf3   :  { %v234_v49 = vadd.f32 %v233_v48, %v149_v40 }
  0xf5   :  { %483 = vtanh.f32 %v234_v49 }
  0xf6   :  { %485 = vtanh.f32 %v239_v47 }
  0xf7   :  { %v480_v50 = vpop.eup %479 }
  0xf8   :  { %v482_v51 = vpop.eup %481  ;;  %336 = vst [vmem:[#allocation5 + $0x8] sm:$0xff] %v480_v50 }
  0xf9   :  { %335 = vst [vmem:[#allocation5] sm:$0xff] %v482_v51 }
  0xff   :  { %v484_v52 = vpop.eup %483 }
 0x100   :  { %v486_v53 = vpop.eup %485  ;;  %430 = vmatprep.mubr.f32.mxu0 %v484_v52 }
 0x101   :  { %431 = vmatmul.mubr.f32.vlgmr.msra.gmra.mrb[0].mxu0 %v486_v53 }
 0x1d4   :  { %v432_v54 = vpop.f32.mrb[0].mxu0 }
 0x1d5   :  { %338 = vst [vmem:[#allocation5 + $0x18] sm:$0xff] %v432_v54  ;;  %v326_v55 = vpop.f32.mrb[1].mxu0 }
 0x1d6   :  { %337 = vst [vmem:[#allocation5 + $0x10] sm:$0xff] %v326_v55 }
 0x1d7   :  { %520 = shalt.err (!%p517_p12)
}
 0x1d8   :  { %s521_s14 = scalar_lea.hbm %s663_s7, 512 }
 0x1d9   :  { %p522_p13 = scmp.ne.s32.totalorder %s663_s7, %s521_s14  ;;  %p525_p0 = scmp.lt.u32.totalorder %s521_s14, %s663_s7 }
 0x1db   :  { %p527_p1 = pnand %p525_p0, %p522_p13 }
 0x1dd   :  { %530 = shalt.err (!%p527_p1)
}
 0x1de   :  { %350 = dma.vmem_to_hbm [thread:$0]  %s345_s6, 512, %s663_s7, [#allocation4], %s536_s11, %s536_s11, %s537_s12  }
 0x1df   :  { %533 = dma.done.wait [#allocation4], 512  }
 0x1e0   :  { %534 = vsyncadd [#allocation4], 4294966784 }
 0x1e1   :  { %354 = vsyncpa [#allocation3], 1 }
 0x1e2   :  { %355 = vsyncpa [#allocation4], 1 }

</bundles_post_ra>
